<compile_context>
chip_gen: v5e
topology: v5e:2x2
jax: 0.10.0
libtpu: 0.0.40
codegen_flags: <defaults>
</compile_context>

<pallas_src>
import functools

import jax
import jax.numpy as jnp
import numpy as np
from jax.experimental import pallas as pl
from jax.experimental.pallas import tpu as pltpu


# ----------------------------------------------------------------------------
# Kernel
# ----------------------------------------------------------------------------
def _upsample_seq_kernel(*refs, N, Hout, Wout, conv_specs):
    """Fused Upsample.forward.

    refs = [x3, u_band, b_up_row, feat_rows,        # inputs (stage 1 + concat)
            (band_i, bias_i) * n_convs,             # inputs (seq convs)
            out,                                    # output (N, Hout, Wout*Cout)
            xp_i * n_convs]                         # VMEM scratch (padded inputs)
    """
    n_convs = len(conv_specs)
    x3_ref, u_ref, bup_ref, feat_ref = refs[0:4]
    conv_refs = refs[4:4 + 2 * n_convs]
    o_ref = refs[4 + 2 * n_convs]
    scratch_refs = refs[5 + 2 * n_convs:]

    rows = N * Hout

    # --- Stage 1: ConvTranspose2d (kernel_size == stride) + bias + ReLU -------
    # out_up[(n,oh),(ow,co)] = sum_{i,wi,ci} x3[(n,oh),(i,wi,ci)] * U[(i,wi,ci),(ow,co)]
    cur = jnp.dot(x3_ref[...], u_ref[...], preferred_element_type=jnp.float32)
    cur = jnp.maximum(cur + bup_ref[...], 0.0)               # (rows, Wout*Cup)

    # --- Stage 2..: channel concat (first conv only) + same-pad convs + ReLU --
    for idx, (cin, cout, ksz) in enumerate(conv_specs):
        xp_ref = scratch_refs[idx]
        band_ref = conv_refs[2 * idx]
        bias_ref = conv_refs[2 * idx + 1]
        lane = Wout * cin
        pad = (ksz - 1) // 2

        # Zero-padded conv input built in VMEM (H padding physical; W padding is
        # folded into the banded weight matrix) -- no padded copy in HBM.
        xp_ref[...] = jnp.zeros(xp_ref.shape, xp_ref.dtype)
        if idx == 0:
            # torch.cat([upsample(x), feature], dim=1): scratch lane layout is
            # [ all (w, c_up) columns | all (w, c_feat) columns ]; the banded
            # weight matrix is built to match, so the concat is just two dense
            # lane-range stores.
            up_w = cur.shape[-1]
            xp_ref[:, pad:pad + Hout, 0:up_w] = cur.reshape(N, Hout, up_w)
            xp_ref[:, pad:pad + Hout, up_w:lane] = feat_ref[...]
        else:
            xp_ref[:, pad:pad + Hout, :] = cur.reshape(N, Hout, lane)

        # Single im2col matmul: concat the KH row-shifted lane-dense slabs and
        # contract against the banded (block-Toeplitz) weight matrix.
        patches = jnp.concatenate(
            [xp_ref[:, kh:kh + Hout, :].reshape(rows, lane) for kh in range(ksz)],
            axis=-1)                                         # (rows, ksz*lane)
        cur = jnp.dot(patches, band_ref[...], preferred_element_type=jnp.float32)
        cur = jnp.maximum(cur + bias_ref[...], 0.0)          # (rows, Wout*cout)

    cout_last = conv_specs[-1][1]
    o_ref[...] = cur.reshape(N, Hout, Wout * cout_last).astype(o_ref.dtype)


# ----------------------------------------------------------------------------
# Wrapper-side operand construction (pure layout / weight plumbing)
# ----------------------------------------------------------------------------
def _upsample_band_matrix(w_up, Win, dtype):
    """U[(i, wi, ci), (ow, co)] = w_up[ci, co, i, ow % s]  iff  wi == ow // s."""
    Cin, Cup, s, s2 = w_up.shape
    assert s == s2
    Wout = Win * s
    wt = jnp.transpose(w_up, (2, 3, 0, 1)).astype(dtype)      # (s, s, Cin, Cup)
    win = jnp.arange(Win)
    ow = jnp.arange(Wout)
    blocks = []
    for i in range(s):
        blk = jnp.zeros((Win * Cin, Wout * Cup), dtype)
        for j in range(s):
            sel = (ow[None, :] == (s * win[:, None] + j)).astype(dtype)  # (Win, Wout)
            blk = blk + jnp.kron(sel, wt[i, j])
        blocks.append(blk)
    return jnp.concatenate(blocks, axis=0)                    # (s*Win*Cin, Wout*Cup)


def _conv_band_matrix(w_oihw, Wout, group_sizes, dtype):
    """Banded matrix B with B[kh*Wout*Cin + row(wi,ci), ow*Cout + co] =
    w[co, ci, kh, kw] iff wi == ow + kw - (KW-1)//2 ('same' W padding folded in).
    Input-channel rows are grouped per `group_sizes` to match the scratch lanes."""
    Cout, Cin, KH, KW = w_oihw.shape
    assert sum(group_sizes) == Cin
    wt = jnp.transpose(w_oihw, (2, 3, 1, 0)).astype(dtype)    # (KH, KW, Cin, Cout)
    wi = jnp.arange(Wout)
    per_kh = []
    for kh in range(KH):
        parts = []
        c0 = 0
        for gs in group_sizes:
            blk = jnp.zeros((Wout * gs, Wout * Cout), dtype)
            for kw in range(KW):
                sel = (wi[:, None] == (wi[None, :] + kw - (KW - 1) // 2)).astype(dtype)
                blk = blk + jnp.kron(sel, wt[kh, kw, c0:c0 + gs, :])
            parts.append(blk)
            c0 += gs
        per_kh.append(jnp.concatenate(parts, axis=0))
    return jnp.concatenate(per_kh, axis=0)                    # (KH*Wout*Cin, Wout*Cout)


def upsample_forward(x, feature, w_up, b_up, conv_params, *, sample):
    """Pallas forward of Upsample:
       ReLU(ConvTranspose2d(x)), cat with `feature`, then ReLU(Conv2d) per layer.

    x          : (N, Cx, Hin, Win)  NCHW
    feature    : (N, Cf, Hin*s, Win*s)  NCHW skip feature
    w_up, b_up : nn.ConvTranspose2d params, (Cx, Cup, s, s), (Cup,)
    conv_params: [(w_oihw, bias), ...] for the 'seq' Conv2d layers (same-pad, stride 1)
    returns    : (N, Cout_last, Hin*s, Win*s)  NCHW
    """
    # TODO(synk): bn=True (BatchNorm2d, no conv bias) path not implemented --
    # this module instance uses the default bn=False.
    dtype = jnp.float32
    N, Cx, Hin, Win = x.shape
    s = sample
    Hout, Wout = Hin * s, Win * s
    Cup = w_up.shape[1]
    Cf = feature.shape[1]

    # ---------------- wrapper-side layout plumbing (free) ----------------
    # x -> parity-tagged row matrix X3[(n, oh), (i, wi, ci)]: row oh = s*h + i
    # carries x[n, h] in column block i, zeros elsewhere, so the transpose-conv
    # (including its depth-to-space) becomes a single lane-dense matmul.
    x_rows = jnp.transpose(x, (0, 2, 3, 1)).reshape(N, Hin, Win * Cx).astype(dtype)
    zeros = jnp.zeros_like(x_rows)
    parity = [jnp.concatenate([x_rows if i2 == i else zeros for i2 in range(s)], axis=-1)
              for i in range(s)]
    x3 = jnp.stack(parity, axis=2).reshape(N * Hout, s * Win * Cx)

    feat_rows = jnp.transpose(feature, (0, 2, 3, 1)).reshape(
        N, Hout, Wout * Cf).astype(dtype)

    u_band = _upsample_band_matrix(w_up, Win, dtype)          # (s*Win*Cx, Wout*Cup)
    bup_row = jnp.tile(b_up.astype(dtype), (Wout,)).reshape(1, Wout * Cup)

    conv_specs = []
    band_args = []
    cin = Cup + Cf
    for li, (w, b) in enumerate(conv_params):
        cout, cin_w, kh, kw = w.shape
        assert cin_w == cin and kh == kw and kh % 2 == 1, \
            "only odd, square, 'same'-padded stride-1 convs (as built by Upsample)"
        groups = (Cup, Cf) if li == 0 else (cin,)
        band_args.append(_conv_band_matrix(w, Wout, groups, dtype))
        band_args.append(jnp.tile(b.astype(dtype), (Wout,)).reshape(1, Wout * cout))
        conv_specs.append((cin, cout, kh))
        cin = cout
    cout_last = conv_specs[-1][1]

    kernel = functools.partial(
        _upsample_seq_kernel, N=N, Hout=Hout, Wout=Wout, conv_specs=tuple(conv_specs))

    vmem = pl.BlockSpec(memory_space=pltpu.MemorySpace.VMEM)
    n_inputs = 4 + len(band_args)
    out_rows = pl.pallas_call(
        kernel,
        out_shape=jax.ShapeDtypeStruct((N, Hout, Wout * cout_last), dtype),
        in_specs=[vmem] * n_inputs,
        out_specs=vmem,
        scratch_shapes=[pltpu.VMEM((N, Hout + (k - 1), Wout * ci), dtype)
                        for (ci, _, k) in conv_specs],
    )(x3, u_band, bup_row, feat_rows, *band_args)

    # Back to NCHW (free wrapper plumbing).
    return jnp.transpose(out_rows.reshape(N, Hout, Wout, cout_last), (0, 3, 1, 2))


# ----------------------------------------------------------------------------
# Self-test
# ----------------------------------------------------------------------------
if __name__ == "__main__":
    # Small deterministic Upsample instance:
    #   upsample: ConvTranspose2d(8 -> 4, kernel_size=2, stride=2) + ReLU
    #   concat with 4-channel skip feature -> 8 channels
    #   seq: Conv2d(8 -> 4, 3, pad=1) + ReLU ; Conv2d(4 -> 4, 3, pad=1) + ReLU
    N, Cx, Cup, Cf, Hin, Win, s = 2, 8, 4, 4, 8, 8, 2
    Hout, Wout = Hin * s, Win * s
    chan, ksz = 4, 3

    keys = jax.random.split(jax.random.PRNGKey(0), 8)
    x = jax.random.normal(keys[0], (N, Cx, Hin, Win), dtype=jnp.float32)
    feature = jax.random.normal(keys[1], (N, Cf, Hout, Wout), dtype=jnp.float32)
    w_up = jax.random.normal(keys[2], (Cx, Cup, s, s), dtype=jnp.float32) * 0.1
    b_up = jax.random.normal(keys[3], (Cup,), dtype=jnp.float32) * 0.1
    w1 = jax.random.normal(keys[4], (chan, Cup + Cf, ksz, ksz), dtype=jnp.float32) * 0.1
    b1 = jax.random.normal(keys[5], (chan,), dtype=jnp.float32) * 0.1
    w2 = jax.random.normal(keys[6], (chan, chan, ksz, ksz), dtype=jnp.float32) * 0.1
    b2 = jax.random.normal(keys[7], (chan,), dtype=jnp.float32) * 0.1

    fwd = jax.jit(functools.partial(upsample_forward, sample=s))
    out = jax.block_until_ready(fwd(x, feature, w_up, b_up, [(w1, b1), (w2, b2)]))

    # ---- pure-JAX reference (same semantics as the PyTorch module) ----
    w_up_conv = jnp.transpose(w_up, (1, 0, 2, 3))[:, :, ::-1, ::-1]      # OIHW, flipped
    up = jax.lax.conv_general_dilated(
        x, w_up_conv, window_strides=(1, 1),
        padding=((s - 1, s - 1), (s - 1, s - 1)), lhs_dilation=(s, s),
        dimension_numbers=("NCHW", "OIHW", "NCHW"))
    up = jnp.maximum(up + b_up.reshape(1, -1, 1, 1), 0.0)
    z = jnp.concatenate([up, feature], axis=1)
    for w, b in [(w1, b1), (w2, b2)]:
        p = (w.shape[-1] - 1) // 2
        z = jax.lax.conv_general_dilated(
            z, w, window_strides=(1, 1), padding=((p, p), (p, p)),
            dimension_numbers=("NCHW", "OIHW", "NCHW"))
        z = jnp.maximum(z + b.reshape(1, -1, 1, 1), 0.0)

    assert out.shape == (N, chan, Hout, Wout), out.shape
    np.testing.assert_allclose(np.asarray(out), np.asarray(z), rtol=1e-4, atol=1e-4)
    print("KERNEL_OK")
</pallas_src>

<mosaic_0001>
module attributes {stable_mosaic.version = 11 : i64} {
  func.func @_upsample_seq_kernel(%arg0: memref<32x128xf32, #tpu.memory_space<vmem>>, %arg1: memref<128x64xf32, #tpu.memory_space<vmem>>, %arg2: memref<1x64xf32, #tpu.memory_space<vmem>>, %arg3: memref<2x16x64xf32, #tpu.memory_space<vmem>>, %arg4: memref<384x64xf32, #tpu.memory_space<vmem>>, %arg5: memref<1x64xf32, #tpu.memory_space<vmem>>, %arg6: memref<192x64xf32, #tpu.memory_space<vmem>>, %arg7: memref<1x64xf32, #tpu.memory_space<vmem>>, %arg8: memref<2x16x64xf32, #tpu.memory_space<vmem>>, %arg9: memref<2x18x128xf32, #tpu.memory_space<vmem>>, %arg10: memref<2x18x64xf32, #tpu.memory_space<vmem>>) attributes {dimension_semantics = [], scalar_prefetch = 0 : i64, scratch_operands = 2 : i64, tpu.core_type = #tpu.core_type<tc>} {
    %c0 = arith.constant 0 : index
    %c0_0 = arith.constant 0 : index
    %0 = vector.load %arg0[%c0, %c0_0] : memref<32x128xf32, #tpu.memory_space<vmem>>, vector<32x128xf32>
    %c0_1 = arith.constant 0 : index
    %c0_2 = arith.constant 0 : index
    %1 = vector.load %arg1[%c0_1, %c0_2] : memref<128x64xf32, #tpu.memory_space<vmem>>, vector<128x64xf32>
    %cst = arith.constant dense<0.000000e+00> : vector<32x64xf32>
    %2 = tpu.matmul %0, %1, %cst {dimension_numbers = #tpu.dot_dimension_numbers<[1], [0], [0], [1], [0, 0, 1, 1], [], []>} : vector<32x128xf32>, vector<128x64xf32>, vector<32x64xf32> -> vector<32x64xf32>
    %c0_3 = arith.constant 0 : index
    %c0_4 = arith.constant 0 : index
    %3 = vector.load %arg2[%c0_3, %c0_4] : memref<1x64xf32, #tpu.memory_space<vmem>>, vector<1x64xf32>
    %4 = vector.broadcast %3 : vector<1x64xf32> to vector<32x64xf32>
    %5 = arith.addf %2, %4 : vector<32x64xf32>
    %cst_5 = arith.constant 0.000000e+00 : f32
    %6 = vector.broadcast %cst_5 : f32 to vector<32x64xf32>
    %7 = arith.maximumf %5, %6 : vector<32x64xf32>
    %cst_6 = arith.constant 0.000000e+00 : f32
    %8 = vector.broadcast %cst_6 : f32 to vector<2x18x128xf32>
    %c0_7 = arith.constant 0 : index
    %c0_8 = arith.constant 0 : index
    %c0_9 = arith.constant 0 : index
    %9 = vector.load %arg9[%c0_7, %c0_8, %c0_9] : memref<2x18x128xf32, #tpu.memory_space<vmem>>, vector<2x18x128xf32>
    tpu.vector_store %arg9[%c0_7, %c0_8, %c0_9], %8 {strides = array<i32>} : memref<2x18x128xf32, #tpu.memory_space<vmem>>, vector<2x18x128xf32>,
    %10 = vector.shape_cast %7 : vector<32x64xf32> to vector<2x16x64xf32>
    %c0_10 = arith.constant 0 : index
    %c1 = arith.constant 1 : index
    %c0_11 = arith.constant 0 : index
    %11 = vector.load %arg9[%c0_10, %c1, %c0_11] : memref<2x18x128xf32, #tpu.memory_space<vmem>>, vector<2x16x64xf32>
    tpu.vector_store %arg9[%c0_10, %c1, %c0_11], %10 {strides = array<i32>} : memref<2x18x128xf32, #tpu.memory_space<vmem>>, vector<2x16x64xf32>,
    %c0_12 = arith.constant 0 : index
    %c0_13 = arith.constant 0 : index
    %c0_14 = arith.constant 0 : index
    %12 = vector.load %arg3[%c0_12, %c0_13, %c0_14] : memref<2x16x64xf32, #tpu.memory_space<vmem>>, vector<2x16x64xf32>
    %c0_15 = arith.constant 0 : index
    %c1_16 = arith.constant 1 : index
    %c64 = arith.constant 64 : index
    %13 = vector.load %arg9[%c0_15, %c1_16, %c64] : memref<2x18x128xf32, #tpu.memory_space<vmem>>, vector<2x16x64xf32>
    tpu.vector_store %arg9[%c0_15, %c1_16, %c64], %12 {strides = array<i32>} : memref<2x18x128xf32, #tpu.memory_space<vmem>>, vector<2x16x64xf32>,
    %c0_17 = arith.constant 0 : index
    %c0_18 = arith.constant 0 : index
    %c0_19 = arith.constant 0 : index
    %14 = vector.load %arg9[%c0_17, %c0_18, %c0_19] : memref<2x18x128xf32, #tpu.memory_space<vmem>>, vector<2x16x128xf32>
    %15 = vector.shape_cast %14 : vector<2x16x128xf32> to vector<32x128xf32>
    %c0_20 = arith.constant 0 : index
    %c1_21 = arith.constant 1 : index
    %c0_22 = arith.constant 0 : index
    %16 = vector.load %arg9[%c0_20, %c1_21, %c0_22] : memref<2x18x128xf32, #tpu.memory_space<vmem>>, vector<2x16x128xf32>
    %17 = vector.shape_cast %16 : vector<2x16x128xf32> to vector<32x128xf32>
    %c0_23 = arith.constant 0 : index
    %c2 = arith.constant 2 : index
    %c0_24 = arith.constant 0 : index
    %18 = vector.load %arg9[%c0_23, %c2, %c0_24] : memref<2x18x128xf32, #tpu.memory_space<vmem>>, vector<2x16x128xf32>
    %19 = vector.shape_cast %18 : vector<2x16x128xf32> to vector<32x128xf32>
    %20 = tpu.concatenate %15, %17, %19 in 1 : vector<32x128xf32>, vector<32x128xf32>, vector<32x128xf32> -> vector<32x384xf32>
    %c0_25 = arith.constant 0 : index
    %c0_26 = arith.constant 0 : index
    %21 = vector.load %arg4[%c0_25, %c0_26] : memref<384x64xf32, #tpu.memory_space<vmem>>, vector<384x64xf32>
    %cst_27 = arith.constant dense<0.000000e+00> : vector<32x64xf32>
    %22 = tpu.matmul %20, %21, %cst_27 {dimension_numbers = #tpu.dot_dimension_numbers<[1], [0], [0], [1], [0, 0, 1, 1], [], []>} : vector<32x384xf32>, vector<384x64xf32>, vector<32x64xf32> -> vector<32x64xf32>
    %c0_28 = arith.constant 0 : index
    %c0_29 = arith.constant 0 : index
    %23 = vector.load %arg5[%c0_28, %c0_29] : memref<1x64xf32, #tpu.memory_space<vmem>>, vector<1x64xf32>
    %24 = vector.broadcast %23 : vector<1x64xf32> to vector<32x64xf32>
    %25 = arith.addf %22, %24 : vector<32x64xf32>
    %cst_30 = arith.constant 0.000000e+00 : f32
    %26 = vector.broadcast %cst_30 : f32 to vector<32x64xf32>
    %27 = arith.maximumf %25, %26 : vector<32x64xf32>
    %cst_31 = arith.constant 0.000000e+00 : f32
    %28 = vector.broadcast %cst_31 : f32 to vector<2x18x64xf32>
    %c0_32 = arith.constant 0 : index
    %c0_33 = arith.constant 0 : index
    %c0_34 = arith.constant 0 : index
    %29 = vector.load %arg10[%c0_32, %c0_33, %c0_34] : memref<2x18x64xf32, #tpu.memory_space<vmem>>, vector<2x18x64xf32>
    tpu.vector_store %arg10[%c0_32, %c0_33, %c0_34], %28 {strides = array<i32>} : memref<2x18x64xf32, #tpu.memory_space<vmem>>, vector<2x18x64xf32>,
    %30 = vector.shape_cast %27 : vector<32x64xf32> to vector<2x16x64xf32>
    %c0_35 = arith.constant 0 : index
    %c1_36 = arith.constant 1 : index
    %c0_37 = arith.constant 0 : index
    %31 = vector.load %arg10[%c0_35, %c1_36, %c0_37] : memref<2x18x64xf32, #tpu.memory_space<vmem>>, vector<2x16x64xf32>
    tpu.vector_store %arg10[%c0_35, %c1_36, %c0_37], %30 {strides = array<i32>} : memref<2x18x64xf32, #tpu.memory_space<vmem>>, vector<2x16x64xf32>,
    %c0_38 = arith.constant 0 : index
    %c0_39 = arith.constant 0 : index
    %c0_40 = arith.constant 0 : index
    %32 = vector.load %arg10[%c0_38, %c0_39, %c0_40] : memref<2x18x64xf32, #tpu.memory_space<vmem>>, vector<2x16x64xf32>
    %33 = vector.shape_cast %32 : vector<2x16x64xf32> to vector<32x64xf32>
    %c0_41 = arith.constant 0 : index
    %c1_42 = arith.constant 1 : index
    %c0_43 = arith.constant 0 : index
    %34 = vector.load %arg10[%c0_41, %c1_42, %c0_43] : memref<2x18x64xf32, #tpu.memory_space<vmem>>, vector<2x16x64xf32>
    %35 = vector.shape_cast %34 : vector<2x16x64xf32> to vector<32x64xf32>
    %c0_44 = arith.constant 0 : index
    %c2_45 = arith.constant 2 : index
    %c0_46 = arith.constant 0 : index
    %36 = vector.load %arg10[%c0_44, %c2_45, %c0_46] : memref<2x18x64xf32, #tpu.memory_space<vmem>>, vector<2x16x64xf32>
    %37 = vector.shape_cast %36 : vector<2x16x64xf32> to vector<32x64xf32>
    %38 = tpu.concatenate %33, %35, %37 in 1 : vector<32x64xf32>, vector<32x64xf32>, vector<32x64xf32> -> vector<32x192xf32>
    %c0_47 = arith.constant 0 : index
    %c0_48 = arith.constant 0 : index
    %39 = vector.load %arg6[%c0_47, %c0_48] : memref<192x64xf32, #tpu.memory_space<vmem>>, vector<192x64xf32>
    %cst_49 = arith.constant dense<0.000000e+00> : vector<32x64xf32>
    %40 = tpu.matmul %38, %39, %cst_49 {dimension_numbers = #tpu.dot_dimension_numbers<[1], [0], [0], [1], [0, 0, 1, 1], [], []>} : vector<32x192xf32>, vector<192x64xf32>, vector<32x64xf32> -> vector<32x64xf32>
    %c0_50 = arith.constant 0 : index
    %c0_51 = arith.constant 0 : index
    %41 = vector.load %arg7[%c0_50, %c0_51] : memref<1x64xf32, #tpu.memory_space<vmem>>, vector<1x64xf32>
    %42 = vector.broadcast %41 : vector<1x64xf32> to vector<32x64xf32>
    %43 = arith.addf %40, %42 : vector<32x64xf32>
    %cst_52 = arith.constant 0.000000e+00 : f32
    %44 = vector.broadcast %cst_52 : f32 to vector<32x64xf32>
    %45 = arith.maximumf %43, %44 : vector<32x64xf32>
    %46 = vector.shape_cast %45 : vector<32x64xf32> to vector<2x16x64xf32>
    %c0_53 = arith.constant 0 : index
    %c0_54 = arith.constant 0 : index
    %c0_55 = arith.constant 0 : index
    %47 = vector.load %arg8[%c0_53, %c0_54, %c0_55] : memref<2x16x64xf32, #tpu.memory_space<vmem>>, vector<2x16x64xf32>
    tpu.vector_store %arg8[%c0_53, %c0_54, %c0_55], %46 {strides = array<i32>} : memref<2x16x64xf32, #tpu.memory_space<vmem>>, vector<2x16x64xf32>,
    return
  }
}

</mosaic_0001>

<bundles_post_ra>
// kernel: tile.18
= control target key start
LH: loop header
LB: loop body
LE: loop exit
PB: predicated region body
PF: predicated region fallthrough
CT: control target
= control target key end

     0   :  { %s28_s0 = inlined_call_operand.vmem [shape: f32[4], index: 0, kind: input, shape index: {}]   ;;  %s29_s1 = inlined_call_operand.vmem [shape: f32[16,4], index: 1, kind: output, shape index: {}]  }
   0x1   :  { %v4_v0 = vld [vmem:[%s28_s0] ss:$0 sm:$0xff] }
   0x2   :  { %5 = vst [vmem:[%s29_s1] sm:$0xff] %v4_v0 }
   0x3   :  { %8 = vst [vmem:[%s29_s1 + $0x8] sm:$0xff] %v4_v0 }

// kernel: tile.19
= control target key start
LH: loop header
LB: loop body
LE: loop exit
PB: predicated region body
PF: predicated region fallthrough
CT: control target
= control target key end

     0   :  { %s131_s10 = smov 60   ;;  %s132_s11 = smov 52   ;;  %vm3_vm0 = vcmask 31744   ;;  %vm9_vm1 = vcmask 523744   ;;  %vm15_vm2 = vcmask 490944   ;;  %vm21_vm3 = vcmask 458144   ;;  %s207_s0 = inlined_call_operand.vmem [shape: f32[16,4], index: 0, kind: input, shape index: {}]   ;;  %s208_s1 = inlined_call_operand.vmem [shape: f32[1,64], index: 1, kind: output, shape index: {}]  }
   0x1   :  { %v101_v0 = vld [vmem:[%s207_s0 + $0xf] sm:$0x1]   ;;  %v103_v1 = vld [vmem:[%s207_s0 + $0xd] sm:$0x1]   ;;  %v105_v2 = vld [vmem:[%s207_s0 + $0xb] sm:$0x1]  }
   0x2   :  { %7 = vrot.lane.b32.xlu0 %v101_v0, %s131_s10  ;;  %19 = vrot.lane.b32.xlu1 %v103_v1, %s132_s11  ;;  %s133_s14 = smov 44   ;;  %v102_v3 = vld [vmem:[%s207_s0 + $0xe] sm:$0x1]   ;;  %v104_v4 = vld [vmem:[%s207_s0 + $0xc] sm:$0x1]   ;;  %s134_s19 = smov 56  }
   0x3   :  { %31 = vrot.lane.b32.xlu2 %v105_v2, %s133_s14  ;;  %s135_s20 = smov 48   ;;  %v106_v5 = vld [vmem:[%s207_s0 + $0xa] sm:$0x1]   ;;  %s136_s23 = smov 40   ;;  %v107_v6 = vld [vmem:[%s207_s0 + $0x9] sm:$0x1]  }
   0x4   :  { %v108_v7 = vld [vmem:[%s207_s0 + $0x8] sm:$0x1]   ;;  %s137_s28 = smov 36   ;;  %s138_s29 = smov 32   ;;  %v109_v8 = vld [vmem:[%s207_s0 + $0x7] sm:$0x1]  }
   0x5   :  { %s139_s3 = smov 28   ;;  %v110_v9 = vld [vmem:[%s207_s0 + $0x6] sm:$0x1]   ;;  %v111_v10 = vld [vmem:[%s207_s0 + $0x5] sm:$0x1]   ;;  %s140_s8 = smov 24  }
   0x6   :  { %s141_s9 = smov 20   ;;  %v112_v11 = vld [vmem:[%s207_s0 + $0x4] sm:$0x1]   ;;  %s142_s12 = smov 16   ;;  %v113_v12 = vld [vmem:[%s207_s0 + $0x3] sm:$0x1]  }
   0x7   :  { %v114_v13 = vld [vmem:[%s207_s0 + $0x2] sm:$0x1]   ;;  %s143_s17 = smov 12   ;;  %s144_s18 = smov 8   ;;  %v115_v14 = vld [vmem:[%s207_s0 + $0x1] sm:$0x1]  }
   0x8   :  { %s145_s21 = smov 4   ;;  %v2_v15 = vld [vmem:[%s207_s0] sm:$0x1]   ;;  %vm27_vm4 = vcmask 425344   ;;  %vm33_vm5 = vcmask 392544   ;;  %vm39_vm6 = vcmask 359744  }
   0x9   :  { %4 = vst.msk [vmem:[#allocation0] sm:$0x1] %vm3_vm0, %v2_v15   ;;  %vm45_vm7 = vcmask 326944   ;;  %vm51_vm8 = vcmask 294144   ;;  %vm57_vm9 = vcmask 261344   ;;  %vm63_vm10 = vcmask 228544  }
   0xa   :  { %13 = vrot.lane.b32.xlu0 %v102_v3, %s134_s19  ;;  %25 = vrot.lane.b32.xlu1 %v104_v4, %s135_s20  ;;  %vm69_vm11 = vcmask 195744   ;;  %vm75_vm12 = vcmask 162944   ;;  %vm81_vm13 = vcmask 130144   ;;  %vm87_vm14 = vcmask 97344  }
   0xb   :  { %37 = vrot.lane.b32.xlu2 %v106_v5, %s136_s23  ;;  %vm93_vm15 = vcmask 64544  }
  0x12   :  { %43 = vrot.lane.b32.xlu0 %v107_v6, %s137_s28  ;;  %49 = vrot.lane.b32.xlu1 %v108_v7, %s138_s29 }
  0x13   :  { %55 = vrot.lane.b32.xlu2 %v109_v8, %s139_s3 }
  0x1a   :  { %61 = vrot.lane.b32.xlu0 %v110_v9, %s140_s8  ;;  %67 = vrot.lane.b32.xlu1 %v111_v10, %s141_s9 }
  0x1b   :  { %73 = vrot.lane.b32.xlu2 %v112_v11, %s142_s12 }
  0x22   :  { %79 = vrot.lane.b32.xlu0 %v113_v12, %s143_s17  ;;  %85 = vrot.lane.b32.xlu1 %v114_v13, %s144_s18 }
  0x23   :  { %91 = vrot.lane.b32.xlu2 %v115_v14, %s145_s21 }
  0x5d   :  { %v32_v16 = vpop.permute.xlu2 %31  }
  0x65   :  { %v38_v17 = vpop.permute.xlu2 %37  }
  0x6d   :  { %v56_v18 = vpop.permute.xlu2 %55  }
  0x74   :  { %v8_v19 = vpop.permute.xlu0 %7   ;;  %v20_v20 = vpop.permute.xlu1 %19  }
  0x75   :  { %10 = vst.msk [vmem:[#allocation0] sm:$0x1] %vm9_vm1, %v8_v19   ;;  %v74_v21 = vpop.permute.xlu2 %73  }
  0x7c   :  { %v14_v22 = vpop.permute.xlu0 %13   ;;  %v26_v23 = vpop.permute.xlu1 %25  }
  0x7d   :  { %16 = vst.msk [vmem:[#allocation0] sm:$0x1] %vm15_vm2, %v14_v22   ;;  %v92_v24 = vpop.permute.xlu2 %91  }
  0x7e   :  { %22 = vst.msk [vmem:[#allocation0] sm:$0x1] %vm21_vm3, %v20_v20  }
  0x7f   :  { %28 = vst.msk [vmem:[#allocation0] sm:$0x1] %vm27_vm4, %v26_v23  }
  0x80   :  { %34 = vst.msk [vmem:[#allocation0] sm:$0x1] %vm33_vm5, %v32_v16  }
  0x81   :  { %40 = vst.msk [vmem:[#allocation0] sm:$0x1] %vm39_vm6, %v38_v17  }
  0x84   :  { %v44_v25 = vpop.permute.xlu0 %43   ;;  %v50_v26 = vpop.permute.xlu1 %49  }
  0x85   :  { %46 = vst.msk [vmem:[#allocation0] sm:$0x1] %vm45_vm7, %v44_v25  }
  0x86   :  { %52 = vst.msk [vmem:[#allocation0] sm:$0x1] %vm51_vm8, %v50_v26  }
  0x87   :  { %58 = vst.msk [vmem:[#allocation0] sm:$0x1] %vm57_vm9, %v56_v18  }
  0x8c   :  { %v62_v27 = vpop.permute.xlu0 %61   ;;  %v68_v28 = vpop.permute.xlu1 %67  }
  0x8d   :  { %64 = vst.msk [vmem:[#allocation0] sm:$0x1] %vm63_vm10, %v62_v27  }
  0x8e   :  { %70 = vst.msk [vmem:[#allocation0] sm:$0x1] %vm69_vm11, %v68_v28  }
  0x8f   :  { %76 = vst.msk [vmem:[#allocation0] sm:$0x1] %vm75_vm12, %v74_v21  }
  0x94   :  { %v80_v29 = vpop.permute.xlu0 %79   ;;  %v86_v30 = vpop.permute.xlu1 %85  }
  0x95   :  { %82 = vst.msk [vmem:[#allocation0] sm:$0x1] %vm81_vm13, %v80_v29  }
  0x96   :  { %88 = vst.msk [vmem:[#allocation0] sm:$0x1] %vm87_vm14, %v86_v30  }
  0x97   :  { %94 = vst.msk [vmem:[#allocation0] sm:$0x1] %vm93_vm15, %v92_v24  }
  0x9e   :  { %v97_v31 = vld [vmem:[#allocation0] sm:$0x1] }
  0x9f   :  { %100 = vst [vmem:[%s208_s1] sm:$0x1] %v97_v31 }

// kernel: upsample_forward.1
= control target key start
LH: loop header
LB: loop body
LE: loop exit
PB: predicated region body
PF: predicated region fallthrough
CT: control target
= control target key end

     0   :  { %s468_s19 = smov 64   ;;  %v469_v56 = vmov 0.0   ;;  %vm92_vm0 = vcmask 523264   ;;  %vm117_vm1 = vcmask 1048064   ;;  %vm279_vm2 = vcmask 517120   ;;  %s871_s1 = inlined_call_operand.vmem [shape: f32[128,64], index: 1, kind: input, shape index: {}]   ;;  %s872_s3 = inlined_call_operand.vmem [shape: f32[2,16,64], index: 3, kind: input, shape index: {}]   ;;  %s873_s2 = inlined_call_operand.vmem [shape: f32[1,64], index: 2, kind: input, shape index: {}]   ;;  %s874_s4 = inlined_call_operand.vmem [shape: f32[384,64], index: 4, kind: input, shape index: {}]   ;;  %s875_s0 = inlined_call_operand.vmem [shape: f32[32,128], index: 0, kind: input, shape index: {}]   ;;  %s876_s5 = inlined_call_operand.vmem [shape: f32[1,64], index: 5, kind: input, shape index: {}]   ;;  %s877_s6 = inlined_call_operand.vmem [shape: f32[192,64], index: 6, kind: input, shape index: {}]   ;;  %s878_s7 = inlined_call_operand.vmem [shape: f32[1,64], index: 7, kind: input, shape index: {}]   ;;  %s879_s8 = inlined_call_operand.vmem [shape: f32[2,16,64], index: 8, kind: output, shape index: {}]  }
   0x1   :  { %v48_v0 = vld [vmem:[%s871_s1 + $0x78] sm:$0xff]  ;;  %v47_v1 = vld [vmem:[%s871_s1 + $0x70] sm:$0xff]  ;;  %v46_v2 = vld [vmem:[%s871_s1 + $0x68] sm:$0xff]  ;;  %86 = vst [vmem:[#allocation2] sm:$0xff] %v469_v56 }
   0x2   :  { %53 = vmatpush.msra.mxu0 %v48_v0  ;;  %v45_v3 = vld [vmem:[%s871_s1 + $0x60] sm:$0xff]  ;;  %v44_v4 = vld [vmem:[%s871_s1 + $0x58] sm:$0xff]  ;;  %v43_v5 = vld [vmem:[%s871_s1 + $0x50] sm:$0xff]  ;;  %87 = vst [vmem:[#allocation2 + $0x8] sm:$0xff] %v469_v56 }
   0x3   :  { %v97_v6 = vld [vmem:[%s872_s3] sm:$0xff]  ;;  %v42_v7 = vld [vmem:[%s871_s1 + $0x48] sm:$0xff]  ;;  %v40_v9 = vld [vmem:[%s871_s1 + $0x38] sm:$0xff]  ;;  %88 = vst [vmem:[#allocation2 + $0x10] sm:$0x3] %v469_v56 }
   0x4   :  { %54 = vmatpush.msra.mxu0 %v47_v1  ;;  %105 = vrot.lane.b32.xlu0 %v97_v6, %s468_s19  ;;  %v41_v8 = vld [vmem:[%s871_s1 + $0x40] sm:$0xff]  ;;  %v39_v10 = vld [vmem:[%s871_s1 + $0x30] sm:$0xff]  ;;  %v98_v11 = vld [vmem:[%s872_s3 + $0x8] sm:$0xff]  ;;  %89 = vst [vmem:[#allocation2 + $0x18] sm:$0xff] %v469_v56 }
   0x5   :  { %v38_v12 = vld [vmem:[%s871_s1 + $0x28] sm:$0xff]  ;;  %v37_v13 = vld [vmem:[%s871_s1 + $0x20] sm:$0xff]  ;;  %v36_v14 = vld [vmem:[%s871_s1 + $0x18] sm:$0xff]  ;;  %90 = vst [vmem:[#allocation2 + $0x20] sm:$0xff] %v469_v56 }
   0x6   :  { %55 = vmatpush.msra.mxu0 %v46_v2  ;;  %v35_v15 = vld [vmem:[%s871_s1 + $0x10] sm:$0xff]  ;;  %v149_v17 = vld [vmem:[%s874_s4 + $0x78] sm:$0xff]  ;;  %v34_v21 = vld [vmem:[%s871_s1 + $0x8] sm:$0xff]  ;;  %91 = vst [vmem:[#allocation2 + $0x28] sm:$0x3] %v469_v56 }
   0x7   :  { %v99_v16 = vld [vmem:[%s872_s3 + $0x10] sm:$0xff]  ;;  %v165_v18 = vld [vmem:[%s874_s4 + $0xf8] sm:$0xff]  ;;  %186 = vmatpush.msra.mxu1 %v149_v17  ;;  %v147_v22 = vld [vmem:[%s874_s4 + $0x68] sm:$0xff]  ;;  %277 = vst.msk [vmem:[#allocation3] sm:$0xff] %vm92_vm0, %v469_v56 }
   0x8   :  { %56 = vmatpush.msra.mxu0 %v45_v3  ;;  %109 = vrot.lane.b32.xlu1 %v99_v16, %s468_s19  ;;  %v148_v19 = vld [vmem:[%s874_s4 + $0x70] sm:$0xff]  ;;  %v163_v23 = vld [vmem:[%s874_s4 + $0xe8] sm:$0xff]  ;;  %v33_v24 = vld [vmem:[%s871_s1] sm:$0xff]  ;;  %278 = vst.msk [vmem:[#allocation3 + $0x8] sm:$0xff] %vm92_vm0, %v469_v56 }
   0x9   :  { %v164_v20 = vld [vmem:[%s874_s4 + $0xf0] sm:$0xff]  ;;  %215 = vmatpush.msra.mxu2 %v165_v18  ;;  %187 = vmatpush.msra.mxu1 %v148_v19  ;;  %v181_v25 = vld [vmem:[%s874_s4 + $0x178] sm:$0xff]  ;;  %v29_v26 = vld [vmem:[%s875_s0] sm:$0xff]  ;;  %281 = vst.msk [vmem:[#allocation3 + $0x18] sm:$0xff] %vm92_vm0, %v469_v56 }
   0xa   :  { %57 = vmatpush.msra.mxu0 %v44_v4  ;;  %v146_v27 = vld [vmem:[%s874_s4 + $0x60] sm:$0xff]  ;;  %244 = vmatpush.msra.mxu3 %v181_v25  ;;  %v180_v28 = vld [vmem:[%s874_s4 + $0x170] sm:$0xff]  ;;  %v100_v29 = vld [vmem:[%s872_s3 + $0x18] sm:$0xff]  ;;  %282 = vst.msk [vmem:[#allocation3 + $0x20] sm:$0xff] %vm92_vm0, %v469_v56 }
   0xb   :  { %216 = vmatpush.msra.mxu2 %v164_v20  ;;  %188 = vmatpush.msra.mxu1 %v147_v22  ;;  %v162_v30 = vld [vmem:[%s874_s4 + $0xe0] sm:$0xff]  ;;  %v145_v31 = vld [vmem:[%s874_s4 + $0x58] sm:$0xff]  ;;  %v179_v32 = vld [vmem:[%s874_s4 + $0x168] sm:$0xff]  ;;  %280 = vst.msk [vmem:[#allocation3 + $0x10] sm:$0x3] %vm279_vm2, %v469_v56 }
   0xc   :  { %58 = vmatpush.msra.mxu0 %v43_v5  ;;  %107 = vrot.lane.b32.xlu0 %v98_v11, %s468_s19  ;;  %v161_v33 = vld [vmem:[%s874_s4 + $0xd8] sm:$0xff]  ;;  %v144_v34 = vld [vmem:[%s874_s4 + $0x50] sm:$0xff]  ;;  %v178_v35 = vld [vmem:[%s874_s4 + $0x160] sm:$0xff]  ;;  %283 = vst.msk [vmem:[#allocation3 + $0x28] sm:$0x3] %vm279_vm2, %v469_v56 }
   0xd   :  { %217 = vmatpush.msra.mxu2 %v163_v23  ;;  %245 = vmatpush.msra.mxu3 %v180_v28  ;;  %v160_v36 = vld [vmem:[%s874_s4 + $0xd0] sm:$0xff]  ;;  %v143_v37 = vld [vmem:[%s874_s4 + $0x48] sm:$0xff]  ;;  %v177_v38 = vld [vmem:[%s874_s4 + $0x158] sm:$0xff] }
   0xe   :  { %59 = vmatpush.msra.mxu0 %v42_v7  ;;  %189 = vmatpush.msra.mxu1 %v146_v27  ;;  %v159_v39 = vld [vmem:[%s874_s4 + $0xc8] sm:$0xff]  ;;  %v142_v41 = vld [vmem:[%s874_s4 + $0x40] sm:$0xff]  ;;  %v141_v43 = vld [vmem:[%s874_s4 + $0x38] sm:$0xff] }
   0xf   :  { %218 = vmatpush.msra.mxu2 %v162_v30  ;;  %246 = vmatpush.msra.mxu3 %v179_v32  ;;  %v30_v40 = vld [vmem:[%s875_s0 + $0x8] sm:$0xff]  ;;  %v158_v42 = vld [vmem:[%s874_s4 + $0xc0] sm:$0xff]  ;;  %v157_v44 = vld [vmem:[%s874_s4 + $0xb8] sm:$0xff] }
  0x10   :  { %60 = vmatpush.msra.mxu0 %v41_v8  ;;  %111 = vrot.lane.b32.xlu1 %v100_v29, %s468_s19  ;;  %v31_v45 = vld [vmem:[%s875_s0 + $0x10] sm:$0xff]  ;;  %v32_v46 = vld [vmem:[%s875_s0 + $0x18] sm:$0xff]  ;;  %v139_v50 = vld [vmem:[%s874_s4 + $0x28] sm:$0xff] }
  0x11   :  { %190 = vmatpush.msra.mxu1 %v145_v31  ;;  %219 = vmatpush.msra.mxu2 %v161_v33  ;;  %v140_v47 = vld [vmem:[%s874_s4 + $0x30] sm:$0xff]  ;;  %v155_v51 = vld [vmem:[%s874_s4 + $0xa8] sm:$0xff]  ;;  %v138_v53 = vld [vmem:[%s874_s4 + $0x20] sm:$0xff] }
  0x12   :  { %61 = vmatpush.msra.mxu0 %v40_v9  ;;  %247 = vmatpush.msra.mxu3 %v178_v35  ;;  %v156_v48 = vld [vmem:[%s874_s4 + $0xb0] sm:$0xff]  ;;  %v175_v52 = vld [vmem:[%s874_s4 + $0x148] sm:$0xff]  ;;  %v154_v54 = vld [vmem:[%s874_s4 + $0xa0] sm:$0xff] }
  0x13   :  { %191 = vmatpush.msra.mxu1 %v144_v34  ;;  %220 = vmatpush.msra.mxu2 %v160_v36  ;;  %v176_v49 = vld [vmem:[%s874_s4 + $0x150] sm:$0xff]  ;;  %v174_v55 = vld [vmem:[%s874_s4 + $0x140] sm:$0xff]  ;;  %v137_v57 = vld [vmem:[%s874_s4 + $0x18] sm:$0xff] }
  0x14   :  { %62 = vmatpush.msra.mxu0 %v39_v10  ;;  %248 = vmatpush.msra.mxu3 %v177_v38  ;;  %v153_v58 = vld [vmem:[%s874_s4 + $0x98] sm:$0xff]  ;;  %v136_v60 = vld [vmem:[%s874_s4 + $0x10] sm:$0xff]  ;;  %v135_v63 = vld [vmem:[%s874_s4 + $0x8] sm:$0xff] }
  0x15   :  { %192 = vmatpush.msra.mxu1 %v143_v37  ;;  %221 = vmatpush.msra.mxu2 %v159_v39  ;;  %v173_v59 = vld [vmem:[%s874_s4 + $0x138] sm:$0xff]  ;;  %v152_v61 = vld [vmem:[%s874_s4 + $0x90] sm:$0xff]  ;;  %v151_v0 = vld [vmem:[%s874_s4 + $0x88] sm:$0xff] }
  0x16   :  { %63 = vmatpush.msra.mxu0 %v38_v12  ;;  %249 = vmatpush.msra.mxu3 %v176_v49  ;;  %v172_v62 = vld [vmem:[%s874_s4 + $0x130] sm:$0xff]  ;;  %v171_v1 = vld [vmem:[%s874_s4 + $0x128] sm:$0xff]  ;;  %v134_v2 = vld [vmem:[%s874_s4] sm:$0xff] }
  0x17   :  { %193 = vmatpush.msra.mxu1 %v142_v41  ;;  %222 = vmatpush.msra.mxu2 %v158_v42  ;;  %v150_v3 = vld [vmem:[%s874_s4 + $0x80] sm:$0xff]  ;;  %v169_v5 = vld [vmem:[%s874_s4 + $0x118] sm:$0xff]  ;;  %v168_v6 = vld [vmem:[%s874_s4 + $0x110] sm:$0xff] }
  0x18   :  { %64 = vmatpush.msra.mxu0 %v37_v13  ;;  %250 = vmatpush.msra.mxu3 %v175_v52  ;;  %v170_v4 = vld [vmem:[%s874_s4 + $0x120] sm:$0xff]  ;;  %v167_v7 = vld [vmem:[%s874_s4 + $0x108] sm:$0xff]  ;;  %v343_v38 = vld [vmem:[%s877_s6 + $0xb8] sm:$0xff] }
  0x19   :  { %194 = vmatpush.msra.mxu1 %v141_v43  ;;  %223 = vmatpush.msra.mxu2 %v157_v44  ;;  %v166_v8 = vld [vmem:[%s874_s4 + $0x100] sm:$0xff]  ;;  %v342_v39 = vld [vmem:[%s877_s6 + $0xb0] sm:$0xff]  ;;  %v339_v42 = vld [vmem:[%s877_s6 + $0x98] sm:$0xff] }
  0x1a   :  { %65 = vmatpush.msra.mxu0 %v36_v14  ;;  %251 = vmatpush.msra.mxu3 %v174_v55  ;;  %v465_v9 = vld [vmem:[%s873_s2] ss:$0 sm:$0xff]  ;;  %v338_v43 = vld [vmem:[%s877_s6 + $0x90] sm:$0xff]  ;;  %v337_v44 = vld [vmem:[%s877_s6 + $0x88] sm:$0xff] }
  0x1b   :  { %195 = vmatpush.msra.mxu1 %v140_v47  ;;  %224 = vmatpush.msra.mxu2 %v156_v48  ;;  %v340_v41 = vld [vmem:[%s877_s6 + $0xa0] sm:$0xff] }
  0x1c   :  { %66 = vmatpush.msra.mxu0 %v35_v15  ;;  %252 = vmatpush.msra.mxu3 %v173_v59  ;;  %v466_v48 = vld [vmem:[%s876_s5] ss:$0 sm:$0xff] }
  0x1d   :  { %196 = vmatpush.msra.mxu1 %v139_v50  ;;  %225 = vmatpush.msra.mxu2 %v155_v51 }
  0x1e   :  { %67 = vmatpush.msra.mxu0 %v34_v21  ;;  %253 = vmatpush.msra.mxu3 %v172_v62 }
  0x1f   :  { %197 = vmatpush.msra.mxu1 %v138_v53  ;;  %226 = vmatpush.msra.mxu2 %v154_v54 }
  0x20   :  { %68 = vmatpush.msra.mxu0 %v33_v24  ;;  %254 = vmatpush.msra.mxu3 %v171_v1  ;;  %v334_v1 = vld [vmem:[%s877_s6 + $0x70] sm:$0xff] }
  0x21   :  { %69 = vmatmul.f32.vlgmr.msra.gmra.mxu0 %v29_v26  ;;  %198 = vmatpush.msra.mxu1 %v137_v57 }
  0x22   :  { %227 = vmatpush.msra.mxu2 %v153_v58  ;;  %255 = vmatpush.msra.mxu3 %v170_v4 }
  0x23   :  { %199 = vmatpush.msra.mxu1 %v136_v60 }
  0x24   :  { %228 = vmatpush.msra.mxu2 %v152_v61  ;;  %256 = vmatpush.msra.mxu3 %v169_v5 }
  0x25   :  { %200 = vmatpush.msra.mxu1 %v135_v63 }
  0x26   :  { %229 = vmatpush.msra.mxu2 %v151_v0  ;;  %257 = vmatpush.msra.mxu3 %v168_v6  ;;  %v335_v0 = vld [vmem:[%s877_s6 + $0x78] sm:$0xff]  ;;  %v332_v6 = vld [vmem:[%s877_s6 + $0x60] sm:$0xff] }
  0x27   :  { %201 = vmatpush.msra.mxu1 %v134_v2  ;;  %360 = vmatpush.msrb.mxu0 %v335_v0 }
  0x28   :  { %230 = vmatpush.msra.mxu2 %v150_v3  ;;  %258 = vmatpush.msra.mxu3 %v167_v7  ;;  %v333_v3 = vld [vmem:[%s877_s6 + $0x68] sm:$0xff] }
  0x29   :  { %72 = vmatmul.f32.gmra.mxu0 %v30_v40  ;;  %397 = vmatpush.msrb.mxu1 %v343_v38  ;;  %v341_v40 = vld [vmem:[%s877_s6 + $0xa8] sm:$0xff] }
  0x2a   :  { %259 = vmatpush.msra.mxu3 %v166_v8  ;;  %434 = vmatpush.msrb.mxu2 %v335_v0 }
  0x2b   :  { %398 = vmatpush.msrb.mxu1 %v342_v39  ;;  %361 = vmatpush.msrb.mxu0 %v334_v1 }
  0x2c   :  { %450 = vmatpush.msrb.mxu3 %v343_v38  ;;  %435 = vmatpush.msrb.mxu2 %v334_v1 }
  0x2d   :  { %399 = vmatpush.msrb.mxu1 %v341_v40  ;;  %362 = vmatpush.msrb.mxu0 %v333_v3 }
  0x2e   :  { %451 = vmatpush.msrb.mxu3 %v342_v39  ;;  %436 = vmatpush.msrb.mxu2 %v333_v3 }
  0x2f   :  { %400 = vmatpush.msrb.mxu1 %v340_v41  ;;  %363 = vmatpush.msrb.mxu0 %v332_v6 }
  0x30   :  { %452 = vmatpush.msrb.mxu3 %v341_v40  ;;  %437 = vmatpush.msrb.mxu2 %v332_v6 }
  0x31   :  { %75 = vmatmul.f32.gmra.mxu0 %v31_v45  ;;  %401 = vmatpush.msrb.mxu1 %v339_v42  ;;  %v336_v45 = vld [vmem:[%s877_s6 + $0x80] sm:$0xff] }
  0x32   :  { %453 = vmatpush.msrb.mxu3 %v340_v41 }
  0x33   :  { %402 = vmatpush.msrb.mxu1 %v338_v43 }
  0x34   :  { %454 = vmatpush.msrb.mxu3 %v339_v42 }
  0x35   :  { %403 = vmatpush.msrb.mxu1 %v337_v44 }
  0x36   :  { %455 = vmatpush.msrb.mxu3 %v338_v43 }
  0x37   :  { %404 = vmatpush.msrb.mxu1 %v336_v45 }
  0x38   :  { %456 = vmatpush.msrb.mxu3 %v337_v44 }
  0x39   :  { %78 = vmatmul.f32.gmra.mxu0 %v32_v46 }
  0x3a   :  { %457 = vmatpush.msrb.mxu3 %v336_v45 }
  0x76   :  { %v106_v12 = vpop.permute.xlu0 %105 }
  0x7a   :  { %v110_v22 = vpop.permute.xlu1 %109 }
  0x7e   :  { %v108_v17 = vpop.permute.xlu0 %107 }
  0x82   :  { %v112_v30 = vpop.permute.xlu1 %111 }
  0x9e   :  { %v70_v10 = vpop.f32.mrf.mxu0 }
  0x9f   :  { %v71_v11 = vadd.f32 %v465_v9, %v70_v10 }
  0xa1   :  { %v82_v13 = vmax.f32 %v71_v11, 0.0 }
  0xa3   :  { %93 = vst.msk [vmem:[#allocation2 + $0x1] sm:$0xff] %vm92_vm0, %v82_v13 }
  0xa4   :  { %118 = vst.msk [vmem:[#allocation2 + $0x1] sm:$0xff] %vm117_vm1, %v106_v12 }
  0xa6   :  { %v73_v14 = vpop.f32.mrf.mxu0 }
  0xa7   :  { %v74_v15 = vadd.f32 %v465_v9, %v73_v14  ;;  %v330_v14 = vld [vmem:[%s877_s6 + $0x50] sm:$0xff] }
  0xa9   :  { %v83_v16 = vmax.f32 %v74_v15, 0.0 }
  0xab   :  { %94 = vst.msk [vmem:[#allocation2 + $0x9] sm:$0xff] %vm92_vm0, %v83_v16  ;;  %v122_v18 = vld [vmem:[#allocation2] sm:$0xff]  ;;  %v329_v16 = vld [vmem:[%s877_s6 + $0x48] sm:$0xff] }
  0xac   :  { %v126_v19 = vld [vmem:[#allocation2 + $0x1] sm:$0xff]  ;;  %119 = vst.msk [vmem:[#allocation2 + $0x9] sm:$0xff] %vm117_vm1, %v108_v17  ;;  %202 = vmatmul.f32.vlgmr.msra.gmra.mxu1 %v122_v18 }
  0xad   :  { %231 = vmatmul.f32.vlgmr.msra.gmra.mxu2 %v126_v19  ;;  %v328_v19 = vld [vmem:[%s877_s6 + $0x40] sm:$0xff] }
  0xae   :  { %v76_v20 = vpop.f32.mrf.mxu0 }
  0xaf   :  { %v77_v21 = vadd.f32 %v465_v9, %v76_v20 }
  0xb1   :  { %v84_v23 = vmax.f32 %v77_v21, 0.0  ;;  %v327_v21 = vld [vmem:[%s877_s6 + $0x38] sm:$0xff] }
  0xb3   :  { %95 = vst.msk [vmem:[#allocation2 + $0x19] sm:$0xff] %vm92_vm0, %v84_v23  ;;  %v123_v24 = vld [vmem:[#allocation2 + $0x8] sm:$0xff] }
  0xb4   :  { %v127_v25 = vld [vmem:[#allocation2 + $0x9] sm:$0xff]  ;;  %120 = vst.msk [vmem:[#allocation2 + $0x19] sm:$0xff] %vm117_vm1, %v110_v22  ;;  %205 = vmatmul.f32.gmra.mxu1 %v123_v24 }
  0xb5   :  { %v130_v26 = vld [vmem:[#allocation2 + $0x2] sm:$0xff]  ;;  %234 = vmatmul.f32.gmra.mxu2 %v127_v25  ;;  %v131_v33 = vld [vmem:[#allocation2 + $0xa] sm:$0xff] }
  0xb6   :  { %260 = vmatmul.f32.vlgmr.msra.gmra.mxu3 %v130_v26  ;;  %v79_v27 = vpop.f32.mrf.mxu0  ;;  %v326_v24 = vld [vmem:[%s877_s6 + $0x30] sm:$0xff]  ;;  %v325_v25 = vld [vmem:[%s877_s6 + $0x28] sm:$0xff]  ;;  %v324_v26 = vld [vmem:[%s877_s6 + $0x20] sm:$0xff] }
  0xb7   :  { %v80_v28 = vadd.f32 %v465_v9, %v79_v27  ;;  %v331_v9 = vld [vmem:[%s877_s6 + $0x58] sm:$0xff] }
  0xb8   :  { %438 = vmatpush.msrb.mxu2 %v331_v9  ;;  %364 = vmatpush.msrb.mxu0 %v331_v9  ;;  %v323_v27 = vld [vmem:[%s877_s6 + $0x18] sm:$0xff] }
  0xb9   :  { %v85_v29 = vmax.f32 %v80_v28, 0.0 }
  0xba   :  { %439 = vmatpush.msrb.mxu2 %v330_v14  ;;  %365 = vmatpush.msrb.mxu0 %v330_v14 }
  0xbb   :  { %96 = vst.msk [vmem:[#allocation2 + $0x21] sm:$0xff] %vm92_vm0, %v85_v29  ;;  %v124_v31 = vld [vmem:[#allocation2 + $0x18] sm:$0xff] }
  0xbc   :  { %v128_v32 = vld [vmem:[#allocation2 + $0x19] sm:$0xff]  ;;  %121 = vst.msk [vmem:[#allocation2 + $0x21] sm:$0xff] %vm117_vm1, %v112_v30  ;;  %208 = vmatmul.f32.gmra.mxu1 %v124_v31  ;;  %440 = vmatpush.msrb.mxu2 %v329_v16 }
  0xbd   :  { %237 = vmatmul.f32.gmra.mxu2 %v128_v32  ;;  %366 = vmatpush.msrb.mxu0 %v329_v16  ;;  %v322_v32 = vld [vmem:[%s877_s6 + $0x10] sm:$0xff] }
  0xbe   :  { %263 = vmatmul.f32.gmra.mxu3 %v131_v33  ;;  %441 = vmatpush.msrb.mxu2 %v328_v19  ;;  %v321_v33 = vld [vmem:[%s877_s6 + $0x8] sm:$0xff] }
  0xbf   :  { %367 = vmatpush.msrb.mxu0 %v328_v19 }
  0xc0   :  { %442 = vmatpush.msrb.mxu2 %v327_v21 }
  0xc1   :  { %368 = vmatpush.msrb.mxu0 %v327_v21 }
  0xc2   :  { %443 = vmatpush.msrb.mxu2 %v326_v24 }
  0xc3   :  { %v125_v34 = vld [vmem:[#allocation2 + $0x20] sm:$0xff]  ;;  %369 = vmatpush.msrb.mxu0 %v326_v24 }
  0xc4   :  { %v129_v35 = vld [vmem:[#allocation2 + $0x21] sm:$0xff]  ;;  %211 = vmatmul.f32.gmra.mxu1 %v125_v34  ;;  %444 = vmatpush.msrb.mxu2 %v325_v25 }
  0xc5   :  { %v132_v36 = vld [vmem:[#allocation2 + $0x1a] sm:$0xff]  ;;  %240 = vmatmul.f32.gmra.mxu2 %v129_v35  ;;  %v133_v37 = vld [vmem:[#allocation2 + $0x22] sm:$0xff]  ;;  %370 = vmatpush.msrb.mxu0 %v325_v25 }
  0xc6   :  { %266 = vmatmul.f32.gmra.mxu3 %v132_v36  ;;  %445 = vmatpush.msrb.mxu2 %v324_v26  ;;  %v320_v35 = vld [vmem:[%s877_s6] sm:$0xff] }
  0xc7   :  { %371 = vmatpush.msrb.mxu0 %v324_v26 }
  0xc8   :  { %446 = vmatpush.msrb.mxu2 %v323_v27 }
  0xc9   :  { %372 = vmatpush.msrb.mxu0 %v323_v27 }
  0xca   :  { %447 = vmatpush.msrb.mxu2 %v322_v32 }
  0xcb   :  { %373 = vmatpush.msrb.mxu0 %v322_v32 }
  0xcc   :  { %448 = vmatpush.msrb.mxu2 %v321_v33 }
  0xcd   :  { %374 = vmatpush.msrb.mxu0 %v321_v33 }
  0xce   :  { %269 = vmatmul.f32.gmra.mxu3 %v133_v37  ;;  %449 = vmatpush.msrb.mxu2 %v320_v35 }
  0xcf   :  { %375 = vmatpush.msrb.mxu0 %v320_v35 }
 0x129   :  { %v203_v46 = vpop.f32.mrf.mxu1 }
 0x12a   :  { %v204_v49 = vadd.f32 %v466_v48, %v203_v46 }
 0x130   :  { %v232_v47 = vpop.f32.mrf.mxu2 }
 0x131   :  { %v206_v50 = vpop.f32.mrf.mxu1  ;;  %v233_v51 = vadd.f32 %v232_v47, %v204_v49  ;;  %v467_v49 = vld [vmem:[%s878_s7] ss:$0 sm:$0xff] }
 0x132   :  { %v207_v56 = vadd.f32 %v466_v48, %v206_v50 }
 0x138   :  { %v235_v52 = vpop.f32.mrf.mxu2 }
 0x139   :  { %v261_v53 = vpop.f32.mrf.mxu3  ;;  %v236_v57 = vadd.f32 %v235_v52, %v207_v56  ;;  %v209_v58 = vpop.f32.mrf.mxu1 }
 0x13a   :  { %v262_v54 = vadd.f32 %v261_v53, %v233_v51  ;;  %v210_v63 = vadd.f32 %v466_v48, %v209_v58 }
 0x13c   :  { %v273_v55 = vmax.f32 %v262_v54, 0.0 }
 0x13e   :  { %284 = vst.msk [vmem:[#allocation3 + $0x1] sm:$0xff] %vm92_vm0, %v273_v55 }
 0x140   :  { %v238_v61 = vpop.f32.mrf.mxu2 }
 0x141   :  { %v264_v59 = vpop.f32.mrf.mxu3  ;;  %v239_v2 = vadd.f32 %v238_v61, %v210_v63  ;;  %v212_v7 = vpop.f32.mrf.mxu1 }
 0x142   :  { %v265_v60 = vadd.f32 %v264_v59, %v236_v57  ;;  %v213_v13 = vadd.f32 %v466_v48, %v212_v7 }
 0x144   :  { %v274_v62 = vmax.f32 %v265_v60, 0.0 }
 0x145   :  { %v292_v29 = vld [vmem:[#allocation3 + $0x1] sm:$0xff] }
 0x146   :  { %285 = vst.msk [vmem:[#allocation3 + $0x9] sm:$0xff] %vm92_vm0, %v274_v62  ;;  %v288_v42 = vld [vmem:[#allocation3] sm:$0xff] }
 0x148   :  { %v241_v10 = vpop.f32.mrf.mxu2 }
 0x149   :  { %v267_v4 = vpop.f32.mrf.mxu3  ;;  %v242_v15 = vadd.f32 %v241_v10, %v213_v13 }
 0x14a   :  { %v268_v5 = vadd.f32 %v267_v4, %v239_v2 }
 0x14c   :  { %v275_v8 = vmax.f32 %v268_v5, 0.0 }
 0x14d   :  { %v293_v11 = vld [vmem:[#allocation3 + $0x9] sm:$0xff] }
 0x14e   :  { %v296_v12 = vld [vmem:[#allocation3 + $0x2] sm:$0xff]  ;;  %286 = vst.msk [vmem:[#allocation3 + $0x19] sm:$0xff] %vm92_vm0, %v275_v8  ;;  %306 = vrot.lane.b32.xlu0 %v293_v11, %s468_s19  ;;  %v297_v23 = vld [vmem:[#allocation3 + $0xa] sm:$0xff] }
 0x14f   :  { %430 = vmatmul.msk.f32.vlgmr.msrb.gmra.mxu1 %vm92_vm0, %v296_v12  ;;  %v289_v47 = vld [vmem:[#allocation3 + $0x8] sm:$0xff] }
 0x151   :  { %v270_v17 = vpop.f32.mrf.mxu3 }
 0x152   :  { %v271_v18 = vadd.f32 %v270_v17, %v242_v15 }
 0x154   :  { %v276_v20 = vmax.f32 %v271_v18, 0.0 }
 0x155   :  { %v294_v22 = vld [vmem:[#allocation3 + $0x19] sm:$0xff] }
 0x156   :  { %287 = vst.msk [vmem:[#allocation3 + $0x21] sm:$0xff] %vm92_vm0, %v276_v20  ;;  %308 = vrot.lane.b32.xlu2 %v294_v22, %s468_s19  ;;  %v290_v37 = vld [vmem:[#allocation3 + $0x18] sm:$0xff] }
 0x157   :  { %431 = vmatmul.msk.f32.gmra.mxu1 %vm92_vm0, %v297_v23 }
 0x15d   :  { %v298_v28 = vld [vmem:[#allocation3 + $0x1a] sm:$0xff]  ;;  %v299_v34 = vld [vmem:[#allocation3 + $0x22] sm:$0xff] }
 0x15e   :  { %v295_v30 = vld [vmem:[#allocation3 + $0x21] sm:$0xff]  ;;  %432 = vmatmul.msk.f32.vlgmr.msrb.gmra.mxu3 %vm92_vm0, %v298_v28 }
 0x15f   :  { %v460_v31 = vpack.i.bf16 %v295_v30, %v292_v29  ;;  %v291_v43 = vld [vmem:[#allocation3 + $0x20] sm:$0xff] }
 0x161   :  { %461 = vrot.lane.b32.xlu2 %v460_v31, %s468_s19 }
 0x166   :  { %433 = vmatmul.msk.f32.gmra.mxu3 %vm92_vm0, %v299_v34 }
 0x1b0   :  { %v309_v36 = vpop.permute.xlu2 %308 }
 0x1b1   :  { %v318_v38 = vsel %vm92_vm0, %v290_v37, %v309_v36 }
 0x1b2   :  { %382 = vmatmul.f32.vlgmr.msrb.gmra.mxu2 %v318_v38 }
 0x1bb   :  { %v462_v39 = vpop.permute.xlu2 %461 }
 0x1bc   :  { %v464_v40 = vunpack.i.h.bf16 %v462_v39  ;;  %v463_v41 = vunpack.i.l.bf16 %v462_v39 }
 0x1be   :  { %v316_v44 = vsel %vm92_vm0, %v288_v42, %v463_v41  ;;  %v319_v45 = vsel %vm92_vm0, %v291_v43, %v464_v40 }
 0x1bf   :  { %376 = vmatmul.f32.vlgmr.msrb.gmra.mxu0 %v316_v44  ;;  %385 = vmatmul.f32.gmra.mxu2 %v319_v45 }
 0x1c0   :  { %v307_v46 = vpop.permute.xlu0 %306 }
 0x1c1   :  { %v317_v48 = vsel %vm92_vm0, %v289_v47, %v307_v46 }
 0x1c7   :  { %379 = vmatmul.f32.gmra.mxu0 %v317_v48 }
 0x1cc   :  { %v406_v55 = vpop.f32.mrf.mxu1 }
 0x1d4   :  { %v409_v2 = vpop.f32.mrf.mxu1 }
 0x1e1   :  { %v412_v52 = vpop.f32.mrf.mxu3 }
 0x1e9   :  { %v415_v62 = vpop.f32.mrf.mxu3 }
 0x235   :  { %v383_v50 = vpop.f32.mrf.mxu2 }
 0x236   :  { %v384_v51 = vadd.f32 %v467_v49, %v383_v50 }
 0x238   :  { %v413_v53 = vadd.f32 %v412_v52, %v384_v51 }
 0x23a   :  { %v420_v54 = vmax.f32 %v413_v53, 0.0 }
 0x23c   :  { %v377_v56 = vpop.f32.mrf.mxu0  ;;  %424 = vst.msk [vmem:[%s879_s8 + $0x10] sm:$0xff] %vm92_vm0, %v420_v54 }
 0x23d   :  { %v378_v57 = vadd.f32 %v467_v49, %v377_v56 }
 0x23f   :  { %v407_v58 = vadd.f32 %v406_v55, %v378_v57 }
 0x241   :  { %v418_v59 = vmax.f32 %v407_v58, 0.0 }
 0x242   :  { %v386_v60 = vpop.f32.mrf.mxu2 }
 0x243   :  { %422 = vst.msk [vmem:[%s879_s8] sm:$0xff] %vm92_vm0, %v418_v59  ;;  %v387_v61 = vadd.f32 %v467_v49, %v386_v60 }
 0x244   :  { %v380_v63 = vpop.f32.mrf.mxu0 }
 0x245   :  { %v416_v0 = vadd.f32 %v415_v62, %v387_v61  ;;  %v381_v1 = vadd.f32 %v467_v49, %v380_v63 }
 0x247   :  { %v421_v3 = vmax.f32 %v416_v0, 0.0  ;;  %v410_v4 = vadd.f32 %v409_v2, %v381_v1 }
 0x249   :  { %425 = vst.msk [vmem:[%s879_s8 + $0x18] sm:$0xff] %vm92_vm0, %v421_v3  ;;  %v419_v5 = vmax.f32 %v410_v4, 0.0 }
 0x24b   :  { %423 = vst.msk [vmem:[%s879_s8 + $0x8] sm:$0xff] %vm92_vm0, %v419_v5 }

</bundles_post_ra>
